<compile_context>
chip_gen: v5e
topology: v5e:2x2
jax: 0.10.0
libtpu: 0.0.40
codegen_flags: <defaults>
</compile_context>

<pallas_src>
import jax
import jax.numpy as jnp
from jax.experimental import pallas as pl
from jax.experimental.pallas import tpu as pltpu


def _proj_kernel(w_ref, x_ref, b_ref, o_ref):
    # w_ref: (Cout, Cin), x_ref: (Cin, tpx), b_ref: (Cout, 1), o_ref: (Cout, tpx)
    acc = jnp.dot(w_ref[...], x_ref[...], preferred_element_type=jnp.float32)
    o_ref[...] = (acc + b_ref[...]).astype(o_ref.dtype)


_LANE = 128
_VMEM_BLOCK_BUDGET = 24 << 20   # double-buffered in+out blocks; safe on v5e/v6e/v7x
_MIN_TOTAL_STEPS = 4            # >=2 steps per TensorCore on v7x (2 TCs/chip)


def _pick_pixel_tile(n_px, batch, cin, cout, itemsize, max_tile_px):
    """Pixel-tile size: multiple of 128, VMEM-budgeted, and >=4 total grid steps
    when the problem allows it (no divisibility requirement vs n_px)."""
    p128 = pl.cdiv(n_px, _LANE) * _LANE
    # VMEM cap: double-buffered input + output block bytes per pixel column.
    bytes_per_px = 2 * (cin + cout) * itemsize
    vmem_cap = max(_LANE, (_VMEM_BLOCK_BUDGET // bytes_per_px) // _LANE * _LANE)
    tpx = max(_LANE, min(p128, max_tile_px, vmem_cap))
    # Prefer >= _MIN_TOTAL_STEPS grid steps so both v7x TensorCores get >=2
    # steps each and input-fetch / output-writeback overlap with compute.
    per_batch = pl.cdiv(_MIN_TOTAL_STEPS, max(batch, 1))
    if per_batch > 1:
        smaller = (p128 // per_batch) // _LANE * _LANE
        if smaller >= _LANE:
            tpx = min(tpx, smaller)
    return tpx


def conv1x1_nchw_pallas(x, w, b, *, max_tile_px=16384, out_dtype=None):
    """1x1 conv as W @ X, NCHW-native.

    x: (B, Cin, H, W) ; w: (Cout, Cin) ; b: (Cout,)  ->  (B, Cout, H, W)
    """
    B, Cin, H, W = x.shape
    Cout = w.shape[0]
    P = H * W
    out_dtype = x.dtype if out_dtype is None else out_dtype
    itemsize = jnp.dtype(x.dtype).itemsize

    x3 = x.reshape(B, Cin, P)   # free reshape, no HBM pass

    tpx = _pick_pixel_tile(P, B, Cin, Cout, itemsize, max_tile_px)
    n_tiles = pl.cdiv(P, tpx)   # ragged tail handled by Pallas boundary clamping
    grid = (B, n_tiles)

    # Explicit scoped-VMEM limit so the large pixel tile also works under
    # v5e's 16 MiB default; capped at 40 MiB (safe within v7x's 64 MiB phys).
    block_bytes = (2 * (Cin + Cout) * tpx + Cout * Cin + Cout) * itemsize
    vmem_limit = int(min(max(block_bytes + (4 << 20), 16 << 20), 40 << 20))

    cost = pl.CostEstimate(
        flops=2 * B * P * Cin * Cout,
        transcendentals=0,
        bytes_accessed=itemsize * (B * Cin * P + Cin * Cout + Cout)
        + jnp.dtype(out_dtype).itemsize * B * Cout * P,
    )

    y3 = pl.pallas_call(
        _proj_kernel,
        out_shape=jax.ShapeDtypeStruct((B, Cout, P), out_dtype),
        grid=grid,
        in_specs=[
            pl.BlockSpec((Cout, Cin), lambda bi, j: (0, 0)),           # weight (resident)
            pl.BlockSpec((None, Cin, tpx), lambda bi, j: (bi, 0, j)),  # x
            pl.BlockSpec((Cout, 1), lambda bi, j: (0, 0)),             # bias (resident)
        ],
        out_specs=pl.BlockSpec((None, Cout, tpx), lambda bi, j: (bi, 0, j)),
        compiler_params=pltpu.CompilerParams(
            dimension_semantics=("parallel", "parallel"),
            vmem_limit_bytes=vmem_limit),
        cost_estimate=cost,
    )(w, x3, b.reshape(Cout, 1))

    return y3.reshape(B, Cout, H, W)


def pixel_shuffle(x, r):
    """PyTorch nn.PixelShuffle: (B, C*r*r, H, W) -> (B, C, H*r, W*r)."""
    B, C, H, W = x.shape
    c_out = C // (r * r)
    x = x.reshape(B, c_out, r, r, H, W)
    x = x.transpose(0, 1, 4, 2, 5, 3)  # (B, c_out, H, r, W, r)
    return x.reshape(B, c_out, H * r, W * r)


class PatchUnEmbedPallas:
    def __init__(self, patch_size=4, out_chans=3, embed_dim=96, key=None):
        self.patch_size = patch_size
        self.out_chans = out_chans
        self.embed_dim = embed_dim
        c_out = out_chans * patch_size ** 2
        if key is None:
            key = jax.random.PRNGKey(0)
        kw, kb = jax.random.split(key)
        # Conv2d(embed_dim, c_out, 1) weight stored as (Cout, Cin): exactly the
        # W @ X layout the kernel wants -- no per-call transpose.
        bound = 1.0 / jnp.sqrt(embed_dim)
        self.weight = jax.random.uniform(
            kw, (c_out, embed_dim), jnp.float32, -bound, bound)
        self.bias = jax.random.uniform(
            kb, (c_out,), jnp.float32, -bound, bound)

    def __call__(self, x):
        # x: (B, embed_dim, H, W)  NCHW
        B, C, H, W = x.shape
        assert C == self.embed_dim
        # 1x1 conv; output is already NCHW (B, Cout, H, W) -- no NHWC round trip.
        y = conv1x1_nchw_pallas(x, self.weight, self.bias)
        # Only the inherent pixel-shuffle rearrange remains as XLA glue.
        return pixel_shuffle(y, self.patch_size)


if __name__ == "__main__":
    key = jax.random.PRNGKey(0)
    k_in, k_param = jax.random.split(key)

    B, embed_dim, H, W = 2, 32, 16, 16
    patch_size, out_chans = 4, 3

    x = jax.random.normal(k_in, (B, embed_dim, H, W), jnp.float32)

    mod = PatchUnEmbedPallas(patch_size=patch_size, out_chans=out_chans,
                             embed_dim=embed_dim, key=k_param)
    fwd = jax.jit(mod.__call__)
    out = jax.block_until_ready(fwd(x))

    # Reference check with plain JAX (1x1 conv + pixel shuffle).
    ref = jnp.einsum('bchw,oc->bohw', x, mod.weight) + mod.bias[None, :, None, None]
    ref = pixel_shuffle(ref, patch_size)
    assert out.shape == (B, out_chans, H * patch_size, W * patch_size), out.shape
    assert jnp.allclose(out, ref, atol=1e-4, rtol=1e-4), "mismatch vs reference"

    print("KERNEL_OK")
</pallas_src>

<mosaic_0001>
module attributes {stable_mosaic.version = 11 : i64} {
  func.func @_proj_kernel(%arg0: i32, %arg1: i32, %arg2: memref<48x32xf32, #tpu.memory_space<vmem>>, %arg3: memref<1x32x128xf32, #tpu.memory_space<vmem>>, %arg4: memref<48x1xf32, #tpu.memory_space<vmem>>, %arg5: memref<1x48x128xf32, #tpu.memory_space<vmem>>) attributes {dimension_semantics = [#tpu.dimension_semantics<parallel>, #tpu.dimension_semantics<parallel>], iteration_bounds = array<i64: 2, 2>, scalar_prefetch = 0 : i64, scratch_operands = 0 : i64, tpu.core_type = #tpu.core_type<tc>, window_params = [{pipeline_mode = #tpu.pipeline_mode<synchronous>, transform_indices = @transform_0, window_bounds = array<i64: 48, 32>}, {transform_indices = @transform_1, window_bounds = array<i64: 1, 32, 128>}, {pipeline_mode = #tpu.pipeline_mode<synchronous>, transform_indices = @transform_2, window_bounds = array<i64: 48, 1>}, {transform_indices = @transform_3, window_bounds = array<i64: 1, 48, 128>}]} {
    %c0 = arith.constant 0 : index
    %c0_0 = arith.constant 0 : index
    %0 = vector.load %arg2[%c0, %c0_0] : memref<48x32xf32, #tpu.memory_space<vmem>>, vector<48x32xf32>
    %c0_1 = arith.constant 0 : index
    %c0_2 = arith.constant 0 : index
    %c0_3 = arith.constant 0 : index
    %1 = vector.load %arg3[%c0_1, %c0_2, %c0_3] : memref<1x32x128xf32, #tpu.memory_space<vmem>>, vector<1x32x128xf32>
    %2 = vector.shape_cast %1 : vector<1x32x128xf32> to vector<32x128xf32>
    %cst = arith.constant dense<0.000000e+00> : vector<48x128xf32>
    %3 = tpu.matmul %0, %2, %cst {dimension_numbers = #tpu.dot_dimension_numbers<[1], [0], [0], [1], [0, 0, 1, 1], [], []>} : vector<48x32xf32>, vector<32x128xf32>, vector<48x128xf32> -> vector<48x128xf32>
    %c0_4 = arith.constant 0 : index
    %c0_5 = arith.constant 0 : index
    %4 = vector.load %arg4[%c0_4, %c0_5] : memref<48x1xf32, #tpu.memory_space<vmem>>, vector<48x1xf32>
    %5 = vector.broadcast %4 : vector<48x1xf32> to vector<48x128xf32>
    %6 = arith.addf %3, %5 : vector<48x128xf32>
    %c0_6 = arith.constant 0 : index
    %c0_7 = arith.constant 0 : index
    %c0_8 = arith.constant 0 : index
    %7 = vector.load %arg5[%c0_6, %c0_7, %c0_8] : memref<1x48x128xf32, #tpu.memory_space<vmem>>, vector<1x48x128xf32>
    %8 = vector.shape_cast %7 : vector<1x48x128xf32> to vector<48x128xf32>
    %9 = vector.shape_cast %6 : vector<48x128xf32> to vector<1x48x128xf32>
    tpu.vector_store %arg5[%c0_6, %c0_7, %c0_8], %9 {strides = array<i32>} : memref<1x48x128xf32, #tpu.memory_space<vmem>>, vector<1x48x128xf32>,
    return
  }
  func.func @transform_0(%arg0: i32, %arg1: i32) -> (i32, i32) {
    %c0_i32 = arith.constant 0 : i32
    %c0_i32_0 = arith.constant 0 : i32
    %c0_i32_1 = arith.constant 0 : i32
    return %c0_i32, %c0_i32_0 : i32, i32
  }
  func.func @transform_1(%arg0: i32, %arg1: i32) -> (i32, i32, i32) {
    %c0_i32 = arith.constant 0 : i32
    %c0_i32_0 = arith.constant 0 : i32
    return %arg0, %c0_i32, %arg1 : i32, i32, i32
  }
  func.func @transform_2(%arg0: i32, %arg1: i32) -> (i32, i32) {
    %c0_i32 = arith.constant 0 : i32
    %c0_i32_0 = arith.constant 0 : i32
    %c0_i32_1 = arith.constant 0 : i32
    return %c0_i32, %c0_i32_0 : i32, i32
  }
  func.func @transform_3(%arg0: i32, %arg1: i32) -> (i32, i32, i32) {
    %c0_i32 = arith.constant 0 : i32
    %c0_i32_0 = arith.constant 0 : i32
    return %arg0, %c0_i32, %arg1 : i32, i32, i32
  }
}

</mosaic_0001>

<bundles_post_ra>
// kernel: a_call__.1
= control target key start
LH: loop header
LB: loop body
LE: loop exit
PB: predicated region body
PF: predicated region fallthrough
CT: control target
= control target key end

     0   :  { %8 = vsyncpa [#allocation3], 0  ;;  %s950_s0 = inlined_call_operand.hbm [shape: f32[48,32], index: 0, kind: input, shape index: {}]   ;;  %s951_s1 = inlined_call_operand.vmem [shape: f32[2,32,256], index: 1, kind: input, shape index: {}]   ;;  %s952_s2 = inlined_call_operand.hbm [shape: f32[48,1], index: 2, kind: input, shape index: {}]   ;;  %s953_s3 = inlined_call_operand.vmem [shape: f32[2,48,256], index: 3, kind: output, shape index: {}]  }
   0x1   :  { %9 = vsyncpa [#allocation6], 0  ;;  %s796_s12 = smov 0   ;;  %s798_s13 = smov 0  }
   0x2   :  { %s800_s14 = smov 0   ;;  %s802_s15 = smov 0  }
   0x3   :  { %s804_s16 = smov 0   ;;  %s806_s17 = smov 0  }
   0x4   :  { %s808_s18 = smov 0  }
   0x5 LB: > { %s528_s19 = sadd.s32 4294967295, %s769_s18   ;;  %s24_s20 = sadd.s32 1, %s761_s16  ;;  %s769_s18 = sphi %s808_s18, %s15_s18   ;;  %s765_s17 = sphi %s806_s17, %s963_s17   ;;  %s761_s16 = sphi %s804_s16, %s962_s16   ;;  %s757_s15 = sphi %s802_s15, %s961_s15   ;;  %s753_s14 = sphi %s800_s14, %s960_s14   ;;  %s749_s13 = sphi %s798_s13, %s959_s13   ;;  %s745_s12 = sphi %s796_s12, %s958_s12  }
   0x6   : > { %p25_p0 = scmp.ge.s32.totalorder %s24_s20, 2  ;;  %s27_s21 = sadd.s32 1, %s765_s17 }
   0x7   : > { %s57_s22 = sadd.s32 1, %s749_s13  ;;  %p64_p1 = scmp.ne.s32.totalorder %s749_s13, %s745_s12 }
   0x8   : > { %s965_s20 = smov (%p25_p0, %s24_s20), 0  ;;  %s967_s21 = smov (!%p25_p0, %s27_s21), %s765_s17 }
   0x9   : > { %s53_s23 = ssub.s32 %s761_s16, %s965_s20  ;;  %p65_p2 = scmp.eq.s32.totalorder %s769_s18, 0 }
   0xa   : > { %p29_p3 = scmp.ge.s32.totalorder %s967_s21, 2  ;;  %p117_p4 = scmp.eq.s32.totalorder %s528_s19, 3 }
   0xb   : > { %p843_p5 = por %p65_p2, %p64_p1  ;;  %p530_p6 = scmp.ge.s32.totalorder %s769_s18, 1 }
   0xc   : > { %s969_s21 = smov (%p29_p3, %s967_s21), 0  ;;  %p850_p7 = por %p117_p4, %p64_p1 }
   0xd   : > { %p130_p8 = scmp.lt.s32.totalorder %s769_s18, 5  ;;  %s52_s26 = ssub.s32 %s765_s17, %s969_s21 }
   0xe   : > { %s54_s27 = sor.u32 %s53_s23, %s52_s26  ;;  %p861_p11 = scmp.eq.s32.totalorder %s528_s19, 0 }
   0xf   : > { %p857_p9 = pnand %p530_p6, %p130_p8  ;;  %p55_p10 = scmp.eq.s32.totalorder %s54_s27, 0 }
  0x10   : > { %s141_s5 = sshll.u32 %s950_s0, 4  ;;  %s771_s7 = smov [#allocation2]   ;;  %s142_s5 = int_to_ptr.hbm [resolvable:$true] %s141_s5 }
  0x11   : > { %p572_p12 = pneg %p857_p9  ;;  %s143_s8 = sshll.u32 %s771_s7, 4  ;;  %s144_s8 = int_to_ptr.vmem [resolvable:$true] %s143_s8 }
  0x12   : > { %s871_s6 = scalar_select %p55_p10, %s749_s13, %s57_s22  }
  0x13   : > { %p573_p13 = pnand %p861_p11, %p572_p12  ;;  %s772_s9 = smov 128  }
  0x14   : > { %s773_s10 = smov 8   ;;  %s155_s23 = sshll.u32 %s952_s2, 4  ;;  %s156_s23 = int_to_ptr.hbm [resolvable:$true] %s155_s23 }
  0x15   : > { %575 = dma.hbm_to_vmem [thread:$0]  (!%p573_p13), %s142_s5, 768, %s144_s8, [#allocation3], %s772_s9, %s772_s9, %s773_s10  }
  0x16   : > { %s774_s26 = smov [#allocation5]   ;;  %p533_p0 = scmp.ge.s32.totalorder %s769_s18, 4 }
  0x17   : > { %s157_s27 = sshll.u32 %s774_s26, 4  ;;  %s158_s27 = int_to_ptr.vmem [resolvable:$true] %s157_s27 }
  0x18   : > { %578 = dma.hbm_to_vmem [thread:$0]  (!%p573_p13), %s156_s23, 768, %s158_s27, [#allocation6], %s772_s9, %s772_s9, %s773_s10  }
  0x19   : > { %167 = sbr.rel (%p533_p0) target bundleno = 40 (0x28), region = 24 }
  0x1e   : > { %170 = sbr.rel (!%p843_p5) target bundleno = 40 (0x28), region = 28  ;;  %s172_s22 = sand.u32 (%p843_p5), 1, %s749_s13  }
  0x1f   : > { %s535_s30 = sshll.u32 (%p843_p5), %s765_s17, 3  ;;  %s534_s4 = sshll.u32 (%p843_p5), %s172_s22, 5 }
  0x20   : > { %s176_s5 = sadd.s32 (%p843_p5), %s761_s16, %s535_s30  ;;  %s174_s9 = scalar_lea.vmem (%p843_p5), [#allocation4], %s534_s4 }
  0x21   : > { %s536_s7 = sshll.u32 (%p843_p5), %s176_s5, 3 }
  0x22   : > { %s178_s19 = scalar_lea.vmem (%p843_p5), %s951_s1, %s536_s7 }
  0x23   : > { %v213_v0 = vld [vmem:[%s178_s19] sm:$0xff]  ;;  %v215_v1 = vld [vmem:[%s178_s19 + $0x10] sm:$0xff] }
  0x24   : > { %v217_v2 = vld [vmem:[%s178_s19 + $0x20] sm:$0xff]  ;;  %214 = vst [vmem:[%s174_s9] sm:$0xff] %v213_v0  ;;  %v219_v3 = vld [vmem:[%s178_s19 + $0x30] sm:$0xff] }
  0x25   : > { %216 = vst [vmem:[%s174_s9 + $0x8] sm:$0xff] %v215_v1 }
  0x26   : > { %218 = vst [vmem:[%s174_s9 + $0x10] sm:$0xff] %v217_v2 }
  0x27   : > { %220 = vst [vmem:[%s174_s9 + $0x18] sm:$0xff] %v219_v3 }
  0x28 PF: > { %229 = sbr.rel (%p857_p9) target bundleno = 212 (0xd4), region = 66 }
  0x2d   : > { %736 = dma.done.wait (%p861_p11), [#allocation3], 768  }
  0x2e   : > { %738 = vsyncadd (%p861_p11), [#allocation3], 4294966528  ;;  %s237_s24 = sand.u32 1, %s745_s12  }
  0x2f   : > { %s539_s10 = sshll.u32 %s237_s24, 5 }
  0x30   : > { %s239_s23 = scalar_lea.vmem [#allocation4], %s539_s10 }
  0x31   : > { %740 = dma.done.wait (%p861_p11), [#allocation6], 768  }
  0x32   : > { %742 = vsyncadd (%p861_p11), [#allocation6], 4294966528  ;;  %v775_v4 = vmov 0   ;;  %v273_v5 = vld [vmem:[%s239_s23 + $0x18] sm:$0xff]  ;;  %v272_v6 = vld [vmem:[%s239_s23 + $0x10] sm:$0xff]  ;;  %vm310_vm0 = vcmask 261120  }
  0x33   : > { %645 = vset.pattern.permute.xlu1 %v775_v4  ;;  %644 = vset.pattern.permute.xlu0 %v775_v4  ;;  %v271_v7 = vld [vmem:[%s239_s23 + $0x8] sm:$0xff]  ;;  %v270_v8 = vld [vmem:[%s239_s23] sm:$0xff]  ;;  %v265_v9 = vld [vmem:[#allocation2 + $0x8] sm:$0xff]  ;;  %s562_s28 = smul.u32 48, %s237_s24 }
  0x34   : > { %646 = vset.pattern.permute.xlu2 %v775_v4  ;;  %550 = vmatpush.msra.mxu1 %v273_v5  ;;  %v267_v10 = vld [vmem:[#allocation2 + $0x18] sm:$0xff]  ;;  %v268_v11 = vld [vmem:[#allocation2 + $0x20] sm:$0xff]  ;;  %v274_v14 = vld [vmem:[#allocation5] sm:$0xff]  ;;  %s563_s12 = smul.u32 (%p850_p7), 12, %s757_s15 }
  0x35   : > { %551 = vmatpush.msra.mxu2 %v273_v5  ;;  %552 = vmatpush.msra.mxu3 %v273_v5  ;;  %v276_v12 = vld [vmem:[#allocation5 + $0x10] sm:$0xff]  ;;  %v278_v15 = vld [vmem:[#allocation5 + $0x20] sm:$0xff]  ;;  %v269_v17 = vld [vmem:[#allocation2 + $0x28] sm:$0xff]  ;;  %s908_s29 = scalar_lea.vmem [#allocation7], %s562_s28 }
  0x36   : > { %341 = vmatpush.msra.mxu0 %v273_v5  ;;  %553 = vmatpush.msra.mxu1 %v272_v6  ;;  %v264_v13 = vld [vmem:[#allocation2] sm:$0xff]  ;;  %v266_v16 = vld [vmem:[#allocation2 + $0x10] sm:$0xff]  ;;  %v277_v18 = vld [vmem:[#allocation5 + $0x18] sm:$0xff]  ;;  %s378_s26 = sadd.s32 (%p850_p7), %s753_s14, %s563_s12 }
  0x37   : > { %554 = vmatpush.msra.mxu2 %v272_v6  ;;  %555 = vmatpush.msra.mxu3 %v272_v6  ;;  %v275_v19 = vld [vmem:[#allocation5 + $0x8] sm:$0xff]  ;;  %s547_s27 = sshll.u32 (%p850_p7), %s378_s26, 3 }
  0x38   : > { %342 = vmatpush.msra.mxu0 %v272_v6  ;;  %556 = vmatpush.msra.mxu1 %v271_v7  ;;  %v279_v20 = vld [vmem:[#allocation5 + $0x28] sm:$0xff]  ;;  %s380_s4 = scalar_lea.vmem (%p850_p7), %s953_s3, %s547_s27 }
  0x39   : > { %557 = vmatpush.msra.mxu2 %v271_v7  ;;  %558 = vmatpush.msra.mxu3 %v271_v7 }
  0x3a   : > { %343 = vmatpush.msra.mxu0 %v271_v7  ;;  %559 = vmatpush.msra.mxu1 %v270_v8 }
  0x3b   : > { %560 = vmatpush.msra.mxu2 %v270_v8  ;;  %561 = vmatpush.msra.mxu3 %v270_v8 }
  0x3c   : > { %542 = vmatmul.msk.f32.vlgmr.msra.gmra.mxu1 %vm310_vm0, %v265_v9  ;;  %544 = vmatmul.msk.f32.vlgmr.msra.gmra.mxu2 %vm310_vm0, %v267_v10 }
  0x3d   : > { %545 = vmatmul.msk.f32.vlgmr.msra.gmra.mxu3 %vm310_vm0, %v268_v11  ;;  %344 = vmatpush.msra.mxu0 %v270_v8 }
  0x3e   : > { %292 = vperm.xlu1 %645, %v276_v12   ;;  %541 = vmatmul.msk.f32.vlgmr.msra.gmra.mxu0 %vm310_vm0, %v264_v13 }
  0x3f   : > { %282 = vperm.xlu0 %644, %v274_v14   ;;  %302 = vperm.xlu2 %646, %v278_v15  }
  0x44   : > { %543 = vmatmul.msk.f32.gmra.mxu1 %vm310_vm0, %v266_v16 }
  0x45   : > { %546 = vmatmul.msk.f32.gmra.mxu3 %vm310_vm0, %v269_v17 }
  0x46   : > { %297 = vperm.xlu1 %645, %v277_v18  }
  0x47   : > { %287 = vperm.xlu0 %644, %v275_v19   ;;  %307 = vperm.xlu2 %646, %v279_v20  }
  0x99   : > { %v303_v28 = vpop.permute.xlu2 %302 }
  0xa1   : > { %v308_v36 = vpop.permute.xlu2 %307 }
  0xb0   : > { %v293_v22 = vpop.permute.xlu1 %292 }
  0xb1   : > { %v283_v21 = vpop.permute.xlu0 %282 }
  0xb8   : > { %v298_v29 = vpop.permute.xlu1 %297 }
  0xb9   : > { %v349_v23 = vpop.f32.mrf.mxu1  ;;  %v288_v24 = vpop.permute.xlu0 %287 }
  0xba   : > { %v350_v25 = vadd.f32 %v349_v23, %v288_v24 }
  0xbb   : > { %v346_v26 = vpop.f32.mrf.mxu0 }
  0xbc   : > { %365 = vst [vmem:[%s908_s29 + $0x8] sm:$0xff] %v350_v25  ;;  %v347_v27 = vadd.f32 %v346_v26, %v283_v21 }
  0xbe   : > { %364 = vst [vmem:[%s908_s29] sm:$0xff] %v347_v27 }
  0xbf   : > { %v355_v30 = vpop.f32.mrf.mxu2 }
  0xc0   : > { %v358_v31 = vpop.f32.mrf.mxu3  ;;  %v356_v32 = vadd.f32 %v355_v30, %v298_v29 }
  0xc1   : > { %v359_v33 = vadd.f32 %v358_v31, %v303_v28  ;;  %v352_v34 = vpop.f32.mrf.mxu1 }
  0xc2   : > { %v353_v35 = vadd.f32 %v352_v34, %v293_v22  ;;  %367 = vst [vmem:[%s908_s29 + $0x18] sm:$0xff] %v356_v32 }
  0xc3   : > { %368 = vst [vmem:[%s908_s29 + $0x20] sm:$0xff] %v359_v33  ;;  %v421_v40 = vld [vmem:[%s908_s29 + $0x8] sm:$0xff] (%p850_p7) }
  0xc4   : > { %366 = vst [vmem:[%s908_s29 + $0x10] sm:$0xff] %v353_v35 }
  0xc5   : > { %v419_v39 = vld [vmem:[%s908_s29] sm:$0xff] (%p850_p7)  ;;  %422 = vst [vmem:[%s380_s4 + $0x10] sm:$0xff] (%p850_p7), %v421_v40 }
  0xc6   : > { %420 = vst [vmem:[%s380_s4] sm:$0xff] (%p850_p7), %v419_v39 }
  0xc7   : > { %376 = sbr.rel (!%p850_p7) target bundleno = 212 (0xd4), region = 82 }
  0xc8   : > { %v361_v37 = vpop.f32.mrf.mxu3 }
  0xc9   : > { %v362_v38 = vadd.f32 %v361_v37, %v308_v36  ;;  %v425_v42 = vld [vmem:[%s908_s29 + $0x18] sm:$0xff] (%p850_p7) }
  0xca   : > { %v427_v43 = vld [vmem:[%s908_s29 + $0x20] sm:$0xff] (%p850_p7)  ;;  %426 = vst [vmem:[%s380_s4 + $0x30] sm:$0xff] (%p850_p7), %v425_v42 }
  0xcb   : > { %369 = vst [vmem:[%s908_s29 + $0x28] sm:$0xff] %v362_v38  ;;  %v423_v41 = vld [vmem:[%s908_s29 + $0x10] sm:$0xff] (%p850_p7) }
  0xcc   : > { %424 = vst [vmem:[%s380_s4 + $0x20] sm:$0xff] %v423_v41 }
  0xcd   : > { %428 = vst [vmem:[%s380_s4 + $0x40] sm:$0xff] %v427_v43 }
  0xd2   : > { %v429_v44 = vld [vmem:[%s908_s29 + $0x28] sm:$0xff] }
  0xd3   : > { %430 = vst [vmem:[%s380_s4 + $0x50] sm:$0xff] %v429_v44 }
  0xd4 PF: > { %s15_s18 = sadd.s32 1, %s769_s18   ;;  %s958_s12 = smov %s749_s13 }
  0xd5   : > { %p12_p1 = scmp.ge.s32.totalorder %s15_s18, 6   ;;  %s959_s13 = smov %s871_s6 }
  0xd6   : > { %s960_s14 = smov %s761_s16  ;;  %s961_s15 = smov %s765_s17 }
  0xd7   : > { %s962_s16 = smov %s965_s20  ;;  %s963_s17 = smov %s969_s21 }
  0xd8   :  { %14 = sbr.rel (!%p12_p1) target bundleno = 5 (0x5), region = 152 }
  0xdd   :  { %446 = vsyncpa [#allocation3], 1 }
  0xde   :  { %448 = vsyncpa [#allocation3 + $0x1], 1 }
  0xdf   :  { %449 = vsyncpa [#allocation6], 1 }

</bundles_post_ra>
